<compile_context>
chip_gen: v7x
topology: tpu7x:2x2x1
jax: 0.10.0
libtpu: 0.0.40
codegen_flags: <defaults>
</compile_context>

<pallas_src>
import functools

import numpy as np
import jax
import jax.numpy as jnp
from jax.experimental import pallas as pl
from jax.experimental.pallas import tpu as pltpu


_LANE_MULT = 512          # batch-tile multiple (fills v6e/v7x 256-lane MXU, v5e 4x128)
_BT_CAP = 16384           # max batch tile (lanes)
_VMEM_BUDGET = 40 << 20   # shrink bt if the per-step estimate exceeds this
_VMEM_CAP = 48 << 20      # v7x has 64 MiB VMEM per TensorCore


def _round_up(x, m):
    return (x + m - 1) // m * m


# ----------------------------------------------------------------------------
# Kernel: per-game Linear+sigmoid -> shared Linear+act -> per-game Linear+tanh.
# Batch in lanes; per-lane game selection done pre-activation with boolean
# where-chains over 8-row-aligned groups; per-lane bias picked by an MXU
# one-hot dot; optional action gather fused into the epilogue.
# ----------------------------------------------------------------------------
def _network_kernel(xt_ref, g1_ref, gq_ref, *rest,
                    n_games, f8, o8, g8, n_out, features, has_action):
    if has_action:
        (a_ref, w1_ref, b1m_ref, w2_ref, b2_ref, wq_ref, bqm_ref, out_ref) = rest
    else:
        (w1_ref, b1m_ref, w2_ref, b2_ref, wq_ref, bqm_ref, out_ref) = rest
        a_ref = None

    bt = xt_ref.shape[1]
    x = xt_ref[...]                                            # (d8, bt) compute dtype

    # ---- layer 1: all games in a single MXU pass (8-row aligned groups) ----
    z_all = jnp.dot(w1_ref[...], x,
                    preferred_element_type=jnp.float32)        # (G*F8, bt) f32

    g1 = g1_ref[...]                                           # (1, bt) int32, permuted game ids
    z = z_all[0:f8]                                            # aligned 8-row slices
    for g in range(1, n_games):                                # static, tiny loop
        z = jnp.where(g1 == g, z_all[g * f8:(g + 1) * f8], z)
    # per-lane bias select on the MXU: (F8, G8) @ one-hot(G8, bt)
    g1_hot = (jax.lax.broadcasted_iota(jnp.int32, (g8, bt), 0) == g1
              ).astype(jnp.float32)
    b1_sel = jnp.dot(b1m_ref[...], g1_hot, preferred_element_type=jnp.float32)
    h1 = jax.nn.sigmoid(z + b1_sel)                            # sigmoid once per row

    # ---- shared layer (f32) ----
    hf = jnp.dot(w2_ref[...], h1, preferred_element_type=jnp.float32) + b2_ref[...]
    if features == 'relu':
        hf = jnp.maximum(hf, 0.0)
    else:                                                      # 'sigmoid'
        hf = jax.nn.sigmoid(hf)

    # ---- Q heads: all games in one pass, select with UNPERMUTED idx ----
    q_all = jnp.dot(wq_ref[...], hf,
                    preferred_element_type=jnp.float32)        # (G*O8, bt)
    gq = gq_ref[...]                                           # (1, bt) int32
    qz = q_all[0:o8]
    for g in range(1, n_games):
        qz = jnp.where(gq == g, q_all[g * o8:(g + 1) * o8], qz)
    gq_hot = (jax.lax.broadcasted_iota(jnp.int32, (g8, bt), 0) == gq
              ).astype(jnp.float32)
    bq_sel = jnp.dot(bqm_ref[...], gq_hot, preferred_element_type=jnp.float32)
    q = jnp.tanh(qz + bq_sel)                                  # (O8, bt), tanh once per row

    if has_action:
        amask = jax.lax.broadcasted_iota(jnp.int32, (o8, bt), 0) == a_ref[...]
        out_ref[...] = jnp.sum(jnp.where(amask, q, 0.0), axis=0, keepdims=True)
    else:
        out_ref[...] = q[:n_out]


# ----------------------------------------------------------------------------
# Parameter init mirroring weights_init (xavier_uniform weights, torch-default
# uniform biases).  Weights stored in torch (out, in) layout, each per-game
# group zero-padded to 8 rows; biases stored as (F8, G8) / (O8, G8) columns.
# Also returns the raw (unpadded) weights for the pure-JAX reference.
# ----------------------------------------------------------------------------
def _xavier_uniform(key, shape, gain):
    fan_out, fan_in = shape                                    # torch Linear weight: (out, in)
    bound = gain * np.sqrt(6.0 / (fan_in + fan_out))
    return jax.random.uniform(key, shape, jnp.float32, -bound, bound)


def init_params(key, input_dims, output_dims, n_features=5):
    n_games = len(input_dims)
    d_max = max(input_dims)
    n_out = output_dims[0]
    assert all(o == n_out for o in output_dims), "torch.stack requires equal heads"
    f8 = _round_up(n_features, 8)
    o8 = _round_up(n_out, 8)
    g8 = _round_up(n_games, 8)
    d8 = _round_up(d_max, 8)
    keys = iter(jax.random.split(key, 4 * n_games + 2))
    gain_relu = float(np.sqrt(2.0))

    w1c = jnp.zeros((n_games * f8, d8), jnp.float32)
    b1m = jnp.zeros((f8, g8), jnp.float32)
    wqc = jnp.zeros((n_games * o8, f8), jnp.float32)
    bqm = jnp.zeros((o8, g8), jnp.float32)
    w1_raw, b1_raw, wq_raw, bq_raw = [], [], [], []
    for g in range(n_games):
        d_in = input_dims[g]
        w = _xavier_uniform(next(keys), (n_features, d_in), gain_relu)
        bb = 1.0 / np.sqrt(d_in)
        b = jax.random.uniform(next(keys), (n_features,), jnp.float32, -bb, bb)
        qw = _xavier_uniform(next(keys), (n_out, n_features), 1.0)
        qbb = 1.0 / np.sqrt(n_features)
        qb = jax.random.uniform(next(keys), (n_out,), jnp.float32, -qbb, qbb)

        w1c = w1c.at[g * f8:g * f8 + n_features, :d_in].set(w)
        b1m = b1m.at[:n_features, g].set(b)
        wqc = wqc.at[g * o8:g * o8 + n_out, :n_features].set(qw)
        bqm = bqm.at[:n_out, g].set(qb)
        w1_raw.append(w); b1_raw.append(b); wq_raw.append(qw); bq_raw.append(qb)

    w2r = _xavier_uniform(next(keys), (n_features, n_features), gain_relu)
    b2b = 1.0 / np.sqrt(n_features)
    b2r = jax.random.uniform(next(keys), (n_features,), jnp.float32, -b2b, b2b)
    w2 = jnp.zeros((f8, f8), jnp.float32).at[:n_features, :n_features].set(w2r)
    b2 = jnp.zeros((f8, 1), jnp.float32).at[:n_features, 0].set(b2r)

    params = dict(w1c=w1c, b1m=b1m, w2=w2, b2=b2, wqc=wqc, bqm=bqm)
    ref_params = dict(w1=w1_raw, b1=b1_raw, w2=w2r, b2=b2r, wq=wq_raw, bq=bq_raw,
                      input_dims=tuple(int(d) for d in input_dims),
                      n_out=int(n_out), n_feat=int(n_features))
    return params, ref_params


# ----------------------------------------------------------------------------
# Wrapper reproducing Network.forward(state, action, idx).  Jittable
# (counting sort + gathers are all jnp; no host numpy per call).
# ----------------------------------------------------------------------------
def network_forward(params, state, idx, action=None, *, n_out,
                    features='relu', block_b=None, compute_dtype=jnp.bfloat16):
    if features not in ('relu', 'sigmoid'):
        raise ValueError(features)

    w1c = params['w1c'].astype(compute_dtype)
    b1m, w2, b2 = params['b1m'], params['w2'], params['b2']
    wqc, bqm = params['wqc'], params['bqm']
    f8 = w2.shape[0]
    d8 = w1c.shape[1]
    g8 = b1m.shape[1]
    n_games = params['w1c'].shape[0] // f8
    o8 = wqc.shape[0] // n_games
    assert n_out <= o8

    state = jnp.asarray(state, jnp.float32)
    idx = jnp.asarray(idx, jnp.int32)
    B = state.shape[0]
    if state.shape[1] > d8:                      # columns beyond d_max are unused by every game
        state = state[:, :d8]

    has_action = action is not None
    n_rows_out = 1 if has_action else n_out
    cd_bytes = jnp.dtype(compute_dtype).itemsize
    n_idx_rows = 3 if has_action else 2

    # ---- batch tile: big (step overhead dominates here), multiple of 512,
    #      ~2 grid steps for large B (v7x has 2 TensorCores), VMEM-capped.
    if block_b is None:
        bt = _round_up((B + 1) // 2, _LANE_MULT)
    else:
        bt = _round_up(max(int(block_b), 1), _LANE_MULT)
    bt = min(bt, _BT_CAP, _round_up(B, _LANE_MULT))

    weight_bytes = sum(int(np.prod(a.shape)) * 4
                       for a in (w1c, b1m, w2, b2, wqc, bqm))

    def vmem_bytes(bt_):
        # streamed blocks (double-buffered): state + int32 index rows + output
        stream = bt_ * (d8 * cd_bytes + n_idx_rows * 8 * 4 + 8 * 4)
        # in-kernel f32 intermediates: z_all, q_all, one-hots, h1/hf/bias/q temps
        inter = bt_ * 4 * (n_games * (f8 + o8) + 2 * g8 + 3 * f8 + 4 * o8)
        return 2 * stream + 2 * inter + 2 * weight_bytes + (4 << 20)

    while bt > _LANE_MULT and vmem_bytes(bt) > _VMEM_BUDGET:
        bt -= _LANE_MULT
    b_pad = _round_up(B, bt)
    pad = b_pad - B
    vmem_limit = int(min(_VMEM_CAP, max(8 << 20, vmem_bytes(bt))))

    # ---- counting sort over games (stable) == torch.cat row permutation ----
    games = jnp.arange(n_games, dtype=jnp.int32)
    onehot = (idx[:, None] == games[None, :]).astype(jnp.int32)        # (B, G)
    csum = jnp.cumsum(onehot, axis=0)                                  # (B, G)
    counts = csum[-1]                                                  # (G,)
    starts = jnp.concatenate([jnp.zeros((1,), jnp.int32),
                              jnp.cumsum(counts)[:-1].astype(jnp.int32)])
    rank = jnp.take_along_axis(csum, idx[:, None], axis=1)[:, 0] - 1   # rank within group
    pos = starts[idx] + rank                                           # destination of row i
    perm = jnp.zeros((B,), jnp.int32).at[pos].set(
        jnp.arange(B, dtype=jnp.int32))                                # perm[p] = source row

    # gather with padded perm -> the batch pad is folded into the gather
    perm_pad = jnp.pad(perm, (0, pad))
    xs = jnp.take(state.astype(compute_dtype), perm_pad, axis=0)       # (b_pad, <=d8)
    if xs.shape[1] < d8:
        xs = jnp.pad(xs, ((0, 0), (0, d8 - xs.shape[1])))
    xt = xs.T                                                          # (d8, b_pad)

    g1 = jnp.take(idx, perm_pad).reshape(1, b_pad)                     # permuted game ids
    gq = jnp.pad(idx, (0, pad)).reshape(1, b_pad)                      # quirk: UNPERMUTED idx

    inputs = [xt, g1, gq]
    if has_action:
        a = jnp.asarray(action).reshape(-1).astype(jnp.int32)
        inputs.append(jnp.pad(a, (0, pad)).reshape(1, b_pad))
    inputs += [w1c, b1m, w2, b2, wqc, bqm]

    row_spec = pl.BlockSpec((1, bt), lambda i: (0, i))
    in_specs = [pl.BlockSpec((d8, bt), lambda i: (0, i)), row_spec, row_spec]
    if has_action:
        in_specs.append(row_spec)
    in_specs += [pl.BlockSpec(w.shape, lambda i: (0, 0))               # resident weights
                 for w in (w1c, b1m, w2, b2, wqc, bqm)]

    out_spec = pl.BlockSpec((n_rows_out, bt), lambda i: (0, i))

    kern = functools.partial(_network_kernel, n_games=n_games, f8=f8, o8=o8,
                             g8=g8, n_out=n_out, features=features,
                             has_action=has_action)
    out = pl.pallas_call(
        kern,
        out_shape=jax.ShapeDtypeStruct((n_rows_out, b_pad), jnp.float32),
        grid=(b_pad // bt,),
        in_specs=in_specs,
        out_specs=out_spec,
        compiler_params=pltpu.CompilerParams(
            dimension_semantics=("parallel",),
            vmem_limit_bytes=vmem_limit),
    )(*inputs)

    if has_action:
        return out[0, :B]                                   # (B,)
    return out[:, :B].T                                     # (B, n_out), game-permuted row order


# ----------------------------------------------------------------------------
# Plain-JAX reference mirroring the torch code path (same compute_dtype cast
# for layer 1 as the kernel) for validation.
# ----------------------------------------------------------------------------
def reference_forward(ref_params, state, idx, action=None, *, features='relu',
                      compute_dtype=jnp.bfloat16):
    state = jnp.asarray(state, jnp.float32)
    idx_np = np.asarray(idx)
    n_games = len(ref_params['w1'])
    state_cd = state.astype(compute_dtype)

    h1 = []
    for i in np.unique(idx_np):
        rows = np.argwhere(idx_np == i).ravel()
        d_in = ref_params['input_dims'][int(i)]
        w = ref_params['w1'][int(i)].astype(compute_dtype)
        z = jnp.dot(state_cd[rows, :d_in], w.T,
                    preferred_element_type=jnp.float32) + ref_params['b1'][int(i)]
        h1.append(jax.nn.sigmoid(z))
    cat_h1 = jnp.concatenate(h1, axis=0)
    hf = cat_h1 @ ref_params['w2'].T + ref_params['b2']
    hf = jnp.maximum(hf, 0.0) if features == 'relu' else jax.nn.sigmoid(hf)
    q = jnp.stack([jnp.tanh(hf @ ref_params['wq'][g].T + ref_params['bq'][g])
                   for g in range(n_games)], axis=1)                     # (B, G, O)

    r = np.arange(len(idx_np))
    if action is not None:
        a = np.asarray(action).reshape(-1).astype(np.int64)
        q_act = q[r[:, None], np.arange(n_games)[None, :], a[:, None]]   # (B, G)
        return q_act[r, idx_np]                                          # (B,)
    return q[r, idx_np, :]                                               # (B, O)


if __name__ == "__main__":
    key = jax.random.PRNGKey(0)
    input_dims = (6, 4)          # per-game state dims (state padded to d8=8 inside)
    output_dims = (3, 3)         # per-game action counts (equal, as torch.stack needs)
    n_features = 5
    n_out = output_dims[0]
    B = 500                      # pads to 512 -> single 512-lane grid step

    kp, ks, ki, ka = jax.random.split(key, 4)
    params, ref_params = init_params(kp, input_dims, output_dims, n_features)
    state = jax.random.normal(ks, (B, max(input_dims)), jnp.float32)
    idx = np.asarray(jax.random.randint(ki, (B,), 0, len(input_dims)), np.int32)
    action = np.asarray(jax.random.randint(ka, (B, 1), 0, n_out), np.int32)

    # no-action path (jitted wrapper, default bf16 layer-1 operands)
    fwd = jax.jit(functools.partial(network_forward, n_out=n_out, features='relu'))
    q = jax.block_until_ready(fwd(params, state, idx))
    q_ref = reference_forward(ref_params, state, idx, features='relu')
    np.testing.assert_allclose(np.asarray(q), np.asarray(q_ref), atol=2e-4, rtol=2e-4)

    # fused-action path
    qa = jax.block_until_ready(
        network_forward(params, state, idx, action, n_out=n_out, features='relu'))
    qa_ref = reference_forward(ref_params, state, idx, action, features='relu')
    np.testing.assert_allclose(np.asarray(qa), np.asarray(qa_ref), atol=2e-4, rtol=2e-4)

    # float32 escape hatch + sigmoid feature branch
    qf = jax.block_until_ready(
        network_forward(params, state, idx, n_out=n_out, features='sigmoid',
                        compute_dtype=jnp.float32))
    qf_ref = reference_forward(ref_params, state, idx, features='sigmoid',
                               compute_dtype=jnp.float32)
    np.testing.assert_allclose(np.asarray(qf), np.asarray(qf_ref), atol=2e-4, rtol=2e-4)

    print("KERNEL_OK")
</pallas_src>

<mosaic_0001>
module attributes {stable_mosaic.version = 11 : i64} {
  func.func @_network_kernel(%arg0: i32, %arg1: memref<8x512xbf16, #tpu.memory_space<vmem>>, %arg2: memref<1x512xi32, #tpu.memory_space<vmem>>, %arg3: memref<1x512xi32, #tpu.memory_space<vmem>>, %arg4: memref<16x8xbf16, #tpu.memory_space<vmem>>, %arg5: memref<8x8xf32, #tpu.memory_space<vmem>>, %arg6: memref<8x8xf32, #tpu.memory_space<vmem>>, %arg7: memref<8x1xf32, #tpu.memory_space<vmem>>, %arg8: memref<16x8xf32, #tpu.memory_space<vmem>>, %arg9: memref<8x8xf32, #tpu.memory_space<vmem>>, %arg10: memref<3x512xf32, #tpu.memory_space<vmem>>) attributes {dimension_semantics = [#tpu.dimension_semantics<parallel>], iteration_bounds = array<i64: 1>, scalar_prefetch = 0 : i64, scratch_operands = 0 : i64, tpu.core_type = #tpu.core_type<tc>, window_params = [{transform_indices = @transform_0, window_bounds = array<i64: 8, 512>}, {transform_indices = @transform_1, window_bounds = array<i64: 1, 512>}, {transform_indices = @transform_2, window_bounds = array<i64: 1, 512>}, {pipeline_mode = #tpu.pipeline_mode<synchronous>, transform_indices = @transform_3, window_bounds = array<i64: 16, 8>}, {pipeline_mode = #tpu.pipeline_mode<synchronous>, transform_indices = @transform_4, window_bounds = array<i64: 8, 8>}, {pipeline_mode = #tpu.pipeline_mode<synchronous>, transform_indices = @transform_5, window_bounds = array<i64: 8, 8>}, {pipeline_mode = #tpu.pipeline_mode<synchronous>, transform_indices = @transform_6, window_bounds = array<i64: 8, 1>}, {pipeline_mode = #tpu.pipeline_mode<synchronous>, transform_indices = @transform_7, window_bounds = array<i64: 16, 8>}, {pipeline_mode = #tpu.pipeline_mode<synchronous>, transform_indices = @transform_8, window_bounds = array<i64: 8, 8>}, {transform_indices = @transform_9, window_bounds = array<i64: 3, 512>}]} {
    %c0 = arith.constant 0 : index
    %c0_0 = arith.constant 0 : index
    %0 = vector.load %arg1[%c0, %c0_0] : memref<8x512xbf16, #tpu.memory_space<vmem>>, vector<8x512xbf16>
    %c0_1 = arith.constant 0 : index
    %c0_2 = arith.constant 0 : index
    %1 = vector.load %arg4[%c0_1, %c0_2] : memref<16x8xbf16, #tpu.memory_space<vmem>>, vector<16x8xbf16>
    %cst = arith.constant dense<0.000000e+00> : vector<16x512xf32>
    %2 = tpu.matmul %1, %0, %cst {dimension_numbers = #tpu.dot_dimension_numbers<[1], [0], [0], [1], [0, 0, 1, 1], [], []>} : vector<16x8xbf16>, vector<8x512xbf16>, vector<16x512xf32> -> vector<16x512xf32>
    %c0_3 = arith.constant 0 : index
    %c0_4 = arith.constant 0 : index
    %3 = vector.load %arg2[%c0_3, %c0_4] : memref<1x512xi32, #tpu.memory_space<vmem>>, vector<1x512xi32>
    %4 = vector.extract_strided_slice %2 {offsets = [0, 0], sizes = [8, 512], strides = [1, 1]} : vector<16x512xf32> to vector<8x512xf32>
    %c1_i32 = arith.constant 1 : i32
    %5 = vector.broadcast %c1_i32 : i32 to vector<1x512xi32>
    %6 = arith.cmpi eq, %3, %5 : vector<1x512xi32>
    %7 = vector.extract_strided_slice %2 {offsets = [8, 0], sizes = [8, 512], strides = [1, 1]} : vector<16x512xf32> to vector<8x512xf32>
    %8 = vector.shape_cast %6 : vector<1x512xi1> to vector<1x512xi1>
    %9 = vector.broadcast %8 : vector<1x512xi1> to vector<8x512xi1>
    %10 = arith.select %9, %7, %4 : vector<8x512xi1>, vector<8x512xf32>
    %11 = tpu.iota {dimensions = array<i32: 0>} : vector<8x512xi32>
    %12 = vector.broadcast %3 : vector<1x512xi32> to vector<8x512xi32>
    %13 = arith.cmpi eq, %11, %12 : vector<8x512xi32>
    %14 = arith.extui %13 : vector<8x512xi1> to vector<8x512xi32>
    %15 = arith.sitofp %14 : vector<8x512xi32> to vector<8x512xf32>
    %c0_5 = arith.constant 0 : index
    %c0_6 = arith.constant 0 : index
    %16 = vector.load %arg5[%c0_5, %c0_6] : memref<8x8xf32, #tpu.memory_space<vmem>>, vector<8x8xf32>
    %cst_7 = arith.constant dense<0.000000e+00> : vector<8x512xf32>
    %17 = tpu.matmul %16, %15, %cst_7 {dimension_numbers = #tpu.dot_dimension_numbers<[1], [0], [0], [1], [0, 0, 1, 1], [], []>} : vector<8x8xf32>, vector<8x512xf32>, vector<8x512xf32> -> vector<8x512xf32>
    %18 = arith.addf %10, %17 : vector<8x512xf32>
    %19 = arith.negf %18 : vector<8x512xf32>
    %20 = math.exp %19 : vector<8x512xf32>
    %cst_8 = arith.constant 1.000000e+00 : f32
    %21 = vector.broadcast %cst_8 : f32 to vector<8x512xf32>
    %22 = arith.addf %21, %20 : vector<8x512xf32>
    %23 = arith.divf %21, %22 : vector<8x512xf32>
    %c0_9 = arith.constant 0 : index
    %c0_10 = arith.constant 0 : index
    %24 = vector.load %arg6[%c0_9, %c0_10] : memref<8x8xf32, #tpu.memory_space<vmem>>, vector<8x8xf32>
    %cst_11 = arith.constant dense<0.000000e+00> : vector<8x512xf32>
    %25 = tpu.matmul %24, %23, %cst_11 {dimension_numbers = #tpu.dot_dimension_numbers<[1], [0], [0], [1], [0, 0, 1, 1], [], []>} : vector<8x8xf32>, vector<8x512xf32>, vector<8x512xf32> -> vector<8x512xf32>
    %c0_12 = arith.constant 0 : index
    %c0_13 = arith.constant 0 : index
    %26 = vector.load %arg7[%c0_12, %c0_13] : memref<8x1xf32, #tpu.memory_space<vmem>>, vector<8x1xf32>
    %27 = vector.broadcast %26 : vector<8x1xf32> to vector<8x512xf32>
    %28 = arith.addf %25, %27 : vector<8x512xf32>
    %cst_14 = arith.constant 0.000000e+00 : f32
    %29 = vector.broadcast %cst_14 : f32 to vector<8x512xf32>
    %30 = arith.maximumf %28, %29 : vector<8x512xf32>
    %c0_15 = arith.constant 0 : index
    %c0_16 = arith.constant 0 : index
    %31 = vector.load %arg8[%c0_15, %c0_16] : memref<16x8xf32, #tpu.memory_space<vmem>>, vector<16x8xf32>
    %cst_17 = arith.constant dense<0.000000e+00> : vector<16x512xf32>
    %32 = tpu.matmul %31, %30, %cst_17 {dimension_numbers = #tpu.dot_dimension_numbers<[1], [0], [0], [1], [0, 0, 1, 1], [], []>} : vector<16x8xf32>, vector<8x512xf32>, vector<16x512xf32> -> vector<16x512xf32>
    %c0_18 = arith.constant 0 : index
    %c0_19 = arith.constant 0 : index
    %33 = vector.load %arg3[%c0_18, %c0_19] : memref<1x512xi32, #tpu.memory_space<vmem>>, vector<1x512xi32>
    %34 = vector.extract_strided_slice %32 {offsets = [0, 0], sizes = [8, 512], strides = [1, 1]} : vector<16x512xf32> to vector<8x512xf32>
    %c1_i32_20 = arith.constant 1 : i32
    %35 = vector.broadcast %c1_i32_20 : i32 to vector<1x512xi32>
    %36 = arith.cmpi eq, %33, %35 : vector<1x512xi32>
    %37 = vector.extract_strided_slice %32 {offsets = [8, 0], sizes = [8, 512], strides = [1, 1]} : vector<16x512xf32> to vector<8x512xf32>
    %38 = vector.shape_cast %36 : vector<1x512xi1> to vector<1x512xi1>
    %39 = vector.broadcast %38 : vector<1x512xi1> to vector<8x512xi1>
    %40 = arith.select %39, %37, %34 : vector<8x512xi1>, vector<8x512xf32>
    %41 = tpu.iota {dimensions = array<i32: 0>} : vector<8x512xi32>
    %42 = vector.broadcast %33 : vector<1x512xi32> to vector<8x512xi32>
    %43 = arith.cmpi eq, %41, %42 : vector<8x512xi32>
    %44 = arith.extui %43 : vector<8x512xi1> to vector<8x512xi32>
    %45 = arith.sitofp %44 : vector<8x512xi32> to vector<8x512xf32>
    %c0_21 = arith.constant 0 : index
    %c0_22 = arith.constant 0 : index
    %46 = vector.load %arg9[%c0_21, %c0_22] : memref<8x8xf32, #tpu.memory_space<vmem>>, vector<8x8xf32>
    %cst_23 = arith.constant dense<0.000000e+00> : vector<8x512xf32>
    %47 = tpu.matmul %46, %45, %cst_23 {dimension_numbers = #tpu.dot_dimension_numbers<[1], [0], [0], [1], [0, 0, 1, 1], [], []>} : vector<8x8xf32>, vector<8x512xf32>, vector<8x512xf32> -> vector<8x512xf32>
    %48 = arith.addf %40, %47 : vector<8x512xf32>
    %49 = math.tanh %48 : vector<8x512xf32>
    %50 = vector.extract_strided_slice %49 {offsets = [0, 0], sizes = [3, 512], strides = [1, 1]} : vector<8x512xf32> to vector<3x512xf32>
    %c0_24 = arith.constant 0 : index
    %c0_25 = arith.constant 0 : index
    %51 = vector.load %arg10[%c0_24, %c0_25] : memref<3x512xf32, #tpu.memory_space<vmem>>, vector<3x512xf32>
    tpu.vector_store %arg10[%c0_24, %c0_25], %50 {strides = array<i32>} : memref<3x512xf32, #tpu.memory_space<vmem>>, vector<3x512xf32>,
    return
  }
  func.func @transform_0(%arg0: i32) -> (i32, i32) {
    %c0_i32 = arith.constant 0 : i32
    %c0_i32_0 = arith.constant 0 : i32
    return %c0_i32, %arg0 : i32, i32
  }
  func.func @transform_1(%arg0: i32) -> (i32, i32) {
    %c0_i32 = arith.constant 0 : i32
    %c0_i32_0 = arith.constant 0 : i32
    return %c0_i32, %arg0 : i32, i32
  }
  func.func @transform_2(%arg0: i32) -> (i32, i32) {
    %c0_i32 = arith.constant 0 : i32
    %c0_i32_0 = arith.constant 0 : i32
    return %c0_i32, %arg0 : i32, i32
  }
  func.func @transform_3(%arg0: i32) -> (i32, i32) {
    %c0_i32 = arith.constant 0 : i32
    %c0_i32_0 = arith.constant 0 : i32
    %c0_i32_1 = arith.constant 0 : i32
    return %c0_i32, %c0_i32_0 : i32, i32
  }
  func.func @transform_4(%arg0: i32) -> (i32, i32) {
    %c0_i32 = arith.constant 0 : i32
    %c0_i32_0 = arith.constant 0 : i32
    %c0_i32_1 = arith.constant 0 : i32
    return %c0_i32, %c0_i32_0 : i32, i32
  }
  func.func @transform_5(%arg0: i32) -> (i32, i32) {
    %c0_i32 = arith.constant 0 : i32
    %c0_i32_0 = arith.constant 0 : i32
    %c0_i32_1 = arith.constant 0 : i32
    return %c0_i32, %c0_i32_0 : i32, i32
  }
  func.func @transform_6(%arg0: i32) -> (i32, i32) {
    %c0_i32 = arith.constant 0 : i32
    %c0_i32_0 = arith.constant 0 : i32
    %c0_i32_1 = arith.constant 0 : i32
    return %c0_i32, %c0_i32_0 : i32, i32
  }
  func.func @transform_7(%arg0: i32) -> (i32, i32) {
    %c0_i32 = arith.constant 0 : i32
    %c0_i32_0 = arith.constant 0 : i32
    %c0_i32_1 = arith.constant 0 : i32
    return %c0_i32, %c0_i32_0 : i32, i32
  }
  func.func @transform_8(%arg0: i32) -> (i32, i32) {
    %c0_i32 = arith.constant 0 : i32
    %c0_i32_0 = arith.constant 0 : i32
    %c0_i32_1 = arith.constant 0 : i32
    return %c0_i32, %c0_i32_0 : i32, i32
  }
  func.func @transform_9(%arg0: i32) -> (i32, i32) {
    %c0_i32 = arith.constant 0 : i32
    %c0_i32_0 = arith.constant 0 : i32
    return %c0_i32, %arg0 : i32, i32
  }
}

</mosaic_0001>

<bundles_post_ra>
// kernel: network_forward.1
= control target key start
LH: loop header
LB: loop body
LE: loop exit
PB: predicated region body
PF: predicated region fallthrough
CT: control target
= control target key end

     0   :  { %v158_v0 = vlaneseq  ;;  %vm56_vm0 = vcmask 1043456   ;;  %v999_v3 = vmov 0   ;;  %vm52_vm1 = vcmask 64512   ;;  %s1194_s0 = inlined_call_operand.vmem [shape: bf16[8,512], index: 0, kind: input, shape index: {}]   ;;  %s1195_s3 = inlined_call_operand.vmem [shape: bf16[16,8], index: 3, kind: input, shape index: {}]   ;;  %s1196_s1 = inlined_call_operand.vmem [shape: s32[1,512], index: 1, kind: input, shape index: {}]   ;;  %s1197_s4 = inlined_call_operand.vmem [shape: f32[8,8], index: 4, kind: input, shape index: {}]   ;;  %s1198_s6 = inlined_call_operand.vmem [shape: f32[8,1], index: 6, kind: input, shape index: {}]   ;;  %s1199_s5 = inlined_call_operand.vmem [shape: f32[8,8], index: 5, kind: input, shape index: {}]   ;;  %s1200_s2 = inlined_call_operand.vmem [shape: s32[1,512], index: 2, kind: input, shape index: {}]   ;;  %s1201_s7 = inlined_call_operand.vmem [shape: f32[16,8], index: 7, kind: input, shape index: {}]   ;;  %s1202_s8 = inlined_call_operand.vmem [shape: f32[8,8], index: 8, kind: input, shape index: {}]   ;;  %s1203_s9 = inlined_call_operand.vmem [shape: f32[3,512], index: 9, kind: output, shape index: {}]  }
   0x1   :  { %v33_v1 = vld [vmem:[%s1194_s0] sm:$0xff]  ;;  %v34_v2 = vld [vmem:[%s1194_s0 + $0x8] sm:$0xff]  ;;  %101 = vmatprep.mubr.bf16.mxu0 %v999_v3  ;;  %144 = vmatprep.mubr.bf16.mxu1 %v999_v3  ;;  %v1000_v21 = vmov 0.0   ;;  %v1001_v22 = vmov 1.0  }
   0x2   :  { %v929_v4 = vcombine.high %v33_v1, %v33_v1  ;;  %v931_v5 = vcombine.high %v34_v2, %v34_v2  ;;  %v928_v6 = vcombine.low %v33_v1, %v33_v1  ;;  %v930_v7 = vcombine.low %v34_v2, %v34_v2  ;;  %969 = vset.pattern.permute.xlu0 %v999_v3  ;;  %v974_v11 = vld [vmem:[%s1195_s3] sm:$0xff]  }
   0x3   :  { %v1061_v8 = vshrl.u32 %v158_v0, 7  ;;  %v155_v12 = vld [vmem:[%s1196_s1] sm:$0xf] }
   0x4   :  { %932 = vmatprep.subr.msk.bf16.mxu0 %vm56_vm0, %v929_v4  ;;  %934 = vmatprep.subr.msk.bf16.mxu1 %vm56_vm0, %v931_v5  ;;  %v58_v9 = vsel %vm56_vm0, %v928_v6, 0  ;;  %v64_v10 = vsel %vm56_vm0, %v930_v7, 0  ;;  %v212_v23 = vld [vmem:[%s1197_s4] sm:$0xff]  ;;  %vm156_vm6 = vcmp.eq.s32.totalorder %v155_v12, 1 }
   0x5   :  { %70 = vmatpush1.bf16.msra.mxu0 %v58_v9  ;;  %113 = vmatpush1.bf16.msra.mxu1 %v64_v10  ;;  %v1070_v13 = vsub.s32 1, %v1061_v8  ;;  %v1073_v14 = vsub.s32 3, %v1061_v8  ;;  %v1076_v15 = vsub.s32 0, %v1061_v8  ;;  %v1079_v16 = vsub.s32 2, %v1061_v8  ;;  %v387_v24 = vld [vmem:[%s1198_s6] sm:$0xff] }
   0x6   :  { %390 = vperm.xlu0 %969, %v387_v24   ;;  %v157_v25 = vsel %vm156_vm6, 1, %v999_v3  ;;  %v386_v5 = vld [vmem:[%s1199_s5] sm:$0xff] }
   0x7   :  { %v191_v17 = vrot.slane %v155_v12, %v1070_v13  ;;  %v199_v18 = vrot.slane %v155_v12, %v1073_v14  ;;  %v187_v19 = vrot.slane %v155_v12, %v1076_v15  ;;  %v195_v20 = vrot.slane %v155_v12, %v1079_v16  ;;  %v704_v10 = vld [vmem:[%s1200_s2] sm:$0xf] }
   0x8   :  { %933 = vmatmul.mubr.msk.bf16.vlgmr.msra.gmra.mrb[0].mxu0 %vm52_vm1, %v974_v11  ;;  %935 = vmatmul.mubr.msk.bf16.vlgmr.msra.gmra.mrb[0].mxu1 %vm52_vm1, %v974_v11  ;;  %v161_v26 = vrot.slane %v157_v25, %v1076_v15  ;;  %v169_v27 = vrot.slane %v157_v25, %v1079_v16  ;;  %v165_v28 = vrot.slane %v157_v25, %v1070_v13  ;;  %vm705_vm15 = vcmp.eq.s32.totalorder %v704_v10, 1 }
   0x9   :  { %vm201_vm2 = vcmp.eq.s32.totalorder %v1061_v8, %v191_v17  ;;  %vm203_vm3 = vcmp.eq.s32.totalorder %v1061_v8, %v199_v18  ;;  %vm200_vm4 = vcmp.eq.s32.totalorder %v1061_v8, %v187_v19  ;;  %vm202_vm5 = vcmp.eq.s32.totalorder %v1061_v8, %v195_v20  ;;  %280 = vmatprep.mubr.f32.mxu0 %v1000_v21 }
   0xa   :  { %940 = vmatprep.subr.msk.mxu0 %vm201_vm2, %v1001_v22  ;;  %943 = vmatprep.subr.msk.mxu1 %vm203_vm3, %v1001_v22  ;;  %v173_v29 = vrot.slane %v157_v25, %v1073_v14  ;;  %vm1112_vm7 = vcmp.eq.s32.totalorder %v161_v26, 1  ;;  %vm1116_vm8 = vcmp.eq.s32.totalorder %v169_v27, 1  ;;  %vm1120_vm9 = vcmp.eq.s32.totalorder %v165_v28, 1 }
   0xb   :  { %941 = vmatpush1.msk.msra.mxu0 %vm200_vm4, %v1001_v22  ;;  %944 = vmatpush1.msk.msra.mxu1 %vm202_vm5, %v1001_v22  ;;  %v738_v24 = vrot.slane %v704_v10, %v1070_v13  ;;  %v746_v26 = vrot.slane %v704_v10, %v1073_v14  ;;  %v734_v28 = vrot.slane %v704_v10, %v1076_v15 }
   0xc   :  { %351 = vmatprep.mubr.f32.mxu1 %v1000_v21  ;;  %vm1124_vm10 = vcmp.eq.s32.totalorder %v173_v29, 1  ;;  %v742_v32 = vrot.slane %v704_v10, %v1079_v16 }
   0xd   :  { %vm748_vm11 = vcmp.eq.s32.totalorder %v1061_v8, %v738_v24  ;;  %vm750_vm12 = vcmp.eq.s32.totalorder %v1061_v8, %v746_v26  ;;  %vm747_vm13 = vcmp.eq.s32.totalorder %v1061_v8, %v734_v28 }
   0xe   :  { %vm749_vm14 = vcmp.eq.s32.totalorder %v1061_v8, %v742_v32  ;;  %v759_v8 = vld [vmem:[%s1202_s8] sm:$0xff] }
  0x10   :  { %942 = vmatmul.mubr.msk.f32.vlgmr.msra.gmra.mrb[4].mxu0 %vm52_vm1, %v212_v23  ;;  %945 = vmatmul.mubr.msk.f32.vlgmr.msra.gmra.mrb[4].mxu1 %vm52_vm1, %v212_v23 }
  0x11   :  { %460 = vmatprep.mubr.f32.mxu0 %v1000_v21  ;;  %531 = vmatprep.mubr.f32.mxu1 %v1000_v21 }
  0x85   :  { %v391_v9 = vpop.permute.xlu0 %390 }
  0xdb   :  { %v103_v30 = vpop.f32.mrb[0].mxu0  ;;  %v146_v31 = vpop.f32.mrb[0].mxu1 }
  0xdc   :  { %v105_v34 = vpop.f32.mrb[1].mxu0  ;;  %v148_v35 = vpop.f32.mrb[1].mxu1 }
  0xdd   :  { %v107_v38 = vpop.f32.mrb[2].mxu0  ;;  %v150_v39 = vpop.f32.mrb[2].mxu1 }
  0xde   :  { %v109_v40 = vpop.f32.mrb[3].mxu0  ;;  %v152_v41 = vpop.f32.mrb[3].mxu1  ;;  %v178_v42 = vsel %vm1112_vm7, %v107_v38, %v103_v30  ;;  %v180_v43 = vsel %vm1116_vm8, %v150_v39, %v146_v31  ;;  %v542_v31 = vld [vmem:[%s1201_s7] sm:$0xff] }
  0xdf   :  { %v179_v44 = vsel %vm1120_vm9, %v109_v40, %v105_v34  ;;  %v181_v45 = vsel %vm1124_vm10, %v152_v41, %v148_v35  ;;  %v543_v34 = vld [vmem:[%s1201_s7 + $0x8] sm:$0xff]  ;;  %v706_v35 = vsel %vm705_vm15, 1, %v999_v3 }
  0xe0   :  { %v718_v36 = vrot.slane %v706_v35, %v1079_v16  ;;  %v714_v37 = vrot.slane %v706_v35, %v1070_v13  ;;  %v722_v39 = vrot.slane %v706_v35, %v1073_v14 }
  0xe2   :  { %vm725_vm2 = vcmp.eq.s32.totalorder %v718_v36, 1  ;;  %vm724_vm3 = vcmp.eq.s32.totalorder %v714_v37, 1 }
  0xe3   :  { %v282_v46 = vpop.f32.mrb[4].mxu0  ;;  %v353_v47 = vpop.f32.mrb[4].mxu1 }
  0xe4   :  { %v358_v48 = vadd.f32 %v282_v46, %v178_v42  ;;  %v360_v49 = vadd.f32 %v353_v47, %v180_v43  ;;  %v284_v50 = vpop.f32.mrb[5].mxu0  ;;  %v355_v51 = vpop.f32.mrb[5].mxu1 }
  0xe5   :  { %v359_v52 = vadd.f32 %v284_v50, %v179_v44  ;;  %v361_v53 = vadd.f32 %v355_v51, %v181_v45 }
  0xe6   :  { %v946_v54 = vmul.f32 -1.442695, %v358_v48  ;;  %v948_v55 = vmul.f32 -1.442695, %v360_v49 }
  0xe7   :  { %v947_v56 = vmul.f32 -1.442695, %v359_v52  ;;  %v949_v57 = vmul.f32 -1.442695, %v361_v53 }
  0xe8   :  { %975 = vpow2.f32 %v946_v54 }
  0xe9   :  { %977 = vpow2.f32 %v948_v55 }
  0xea   :  { %979 = vpow2.f32 %v947_v56 }
  0xeb   :  { %981 = vpow2.f32 %v949_v57 }
  0xf2   :  { %v976_v58 = vpop.eup %975 }
  0xf3   :  { %v978_v59 = vpop.eup %977  ;;  %v374_v60 = vadd.f32 1.0, %v976_v58 }
  0xf4   :  { %v980_v61 = vpop.eup %979  ;;  %v376_v63 = vadd.f32 1.0, %v978_v59 }
  0xf5   :  { %v982_v62 = vpop.eup %981  ;;  %v375_v0 = vadd.f32 1.0, %v980_v61  ;;  %983 = vrcp.f32 %v374_v60 }
  0xf6   :  { %v377_v1 = vadd.f32 1.0, %v982_v62 }
  0xf7   :  { %985 = vrcp.f32 %v375_v0 }
  0xf8   :  { %987 = vrcp.f32 %v377_v1 }
  0xf9   :  { %989 = vrcp.f32 %v376_v63 }
  0xff   :  { %v984_v2 = vpop.eup %983 }
 0x101   :  { %v986_v4 = vpop.eup %985 }
 0x102   :  { %v988_v6 = vpop.eup %987  ;;  %396 = vmatprep.subr.mxu0 %v986_v4 }
 0x103   :  { %v990_v7 = vpop.eup %989  ;;  %467 = vmatprep.subr.mxu1 %v988_v6  ;;  %397 = vmatpush1.msra.mxu0 %v984_v2 }
 0x104   :  { %468 = vmatpush1.msra.mxu1 %v990_v7  ;;  %950 = vmatmul.mubr.msk.f32.vlgmr.msra.gmra.mrb[6].mxu0 %vm52_vm1, %v386_v5 }
 0x105   :  { %951 = vmatmul.mubr.msk.f32.vlgmr.msra.gmra.mrb[6].mxu1 %vm52_vm1, %v386_v5  ;;  %614 = vmatprep.mubr.f32.mxu0 %v1000_v21 }
 0x106   :  { %691 = vmatprep.mubr.f32.mxu1 %v1000_v21 }
 0x1d7   :  { %v462_v11 = vpop.f32.mrb[6].mxu0 }
 0x1d8   :  { %v463_v12 = vadd.f32 %v462_v11, %v391_v9  ;;  %v533_v17 = vpop.f32.mrb[6].mxu1  ;;  %v464_v18 = vpop.f32.mrb[7].mxu0 }
 0x1d9   :  { %v534_v19 = vadd.f32 %v533_v17, %v391_v9  ;;  %v465_v20 = vadd.f32 %v464_v18, %v391_v9  ;;  %v535_v23 = vpop.f32.mrb[7].mxu1 }
 0x1da   :  { %v536_v25 = vadd.f32 %v535_v23, %v391_v9  ;;  %v538_v29 = vmax.f32 %v463_v12, 0.0 }
 0x1db   :  { %v539_v27 = vmax.f32 %v465_v20, 0.0  ;;  %v540_v33 = vmax.f32 %v534_v19, 0.0 }
 0x1dc   :  { %v541_v30 = vmax.f32 %v536_v25, 0.0 }
 0x1dd   :  { %550 = vmatprep.subr.mxu0 %v539_v27 }
 0x1de   :  { %627 = vmatprep.subr.mxu1 %v541_v30  ;;  %551 = vmatpush1.msra.mxu0 %v538_v29 }
 0x1df   :  { %628 = vmatpush1.msra.mxu1 %v540_v33  ;;  %952 = vmatmul.mubr.msk.f32.vlgmr.msra.gmra.mrb[8].mxu0 %vm52_vm1, %v542_v31 }
 0x1e0   :  { %954 = vmatmul.mubr.msk.f32.vlgmr.msra.gmra.mrb[8].mxu1 %vm52_vm1, %v542_v31  ;;  %960 = vmatprep.subr.msk.mxu0 %vm748_vm11, %v1001_v22 }
 0x1e1   :  { %963 = vmatprep.subr.msk.mxu1 %vm750_vm12, %v1001_v22  ;;  %620 = vmatprep.mubr.f32.mxu0 %v1000_v21 }
 0x1e2   :  { %697 = vmatprep.mubr.f32.mxu1 %v1000_v21  ;;  %961 = vmatpush1.msk.msra.mxu0 %vm747_vm13, %v1001_v22 }
 0x1e3   :  { %964 = vmatpush1.msk.msra.mxu1 %vm749_vm14, %v1001_v22  ;;  %953 = vmatmul.mubr.msk.f32.gmra.mrb[10].mxu0 %vm52_vm1, %v543_v34  ;;  %v710_v22 = vrot.slane %v706_v35, %v1076_v15 }
 0x1e4   :  { %955 = vmatmul.mubr.msk.f32.gmra.mrb[10].mxu1 %vm52_vm1, %v543_v34  ;;  %827 = vmatprep.mubr.f32.mxu0 %v1000_v21 }
 0x1e5   :  { %898 = vmatprep.mubr.f32.mxu1 %v1000_v21  ;;  %vm723_vm0 = vcmp.eq.s32.totalorder %v710_v22, 1 }
 0x1e7   :  { %962 = vmatmul.mubr.msk.f32.vlgmr.msra.gmra.mrb[12].mxu0 %vm52_vm1, %v759_v8 }
 0x1e8   :  { %965 = vmatmul.mubr.msk.f32.vlgmr.msra.gmra.mrb[12].mxu1 %vm52_vm1, %v759_v8  ;;  %vm1182_vm1 = vcmp.eq.s32.totalorder %v722_v39, 1 }
 0x2b2   :  { %v616_v38 = vpop.f32.mrb[8].mxu0 }
 0x2b3   :  { %v693_v40 = vpop.f32.mrb[8].mxu1  ;;  %v618_v41 = vpop.f32.mrb[9].mxu0 }
 0x2b4   :  { %v695_v42 = vpop.f32.mrb[9].mxu1 }
 0x2b6   :  { %v622_v21 = vpop.f32.mrb[10].mxu0 }
 0x2b7   :  { %v699_v3 = vpop.f32.mrb[10].mxu1  ;;  %v624_v15 = vpop.f32.mrb[11].mxu0  ;;  %v727_v44 = vsel %vm723_vm0, %v622_v21, %v616_v38 }
 0x2b8   :  { %v701_v16 = vpop.f32.mrb[11].mxu1  ;;  %v729_v45 = vsel %vm725_vm2, %v699_v3, %v693_v40  ;;  %v728_v13 = vsel %vm724_vm3, %v624_v15, %v618_v41 }
 0x2b9   :  { %v730_v14 = vsel %vm1182_vm1, %v701_v16, %v695_v42 }
 0x2ba   :  { %v829_v46 = vpop.f32.mrb[12].mxu0 }
 0x2bb   :  { %v905_v47 = vadd.f32 %v829_v46, %v727_v44  ;;  %v900_v48 = vpop.f32.mrb[12].mxu1  ;;  %v831_v49 = vpop.f32.mrb[13].mxu0 }
 0x2bc   :  { %v907_v50 = vadd.f32 %v900_v48, %v729_v45  ;;  %v906_v51 = vadd.f32 %v831_v49, %v728_v13  ;;  %v902_v52 = vpop.f32.mrb[13].mxu1 }
 0x2bd   :  { %991 = vtanh.f32 %v905_v47  ;;  %v908_v53 = vadd.f32 %v902_v52, %v730_v14 }
 0x2be   :  { %993 = vtanh.f32 %v907_v50 }
 0x2bf   :  { %995 = vtanh.f32 %v906_v51 }
 0x2c0   :  { %997 = vtanh.f32 %v908_v53 }
 0x2c7   :  { %v992_v54 = vpop.eup %991 }
 0x2c8   :  { %v994_v55 = vpop.eup %993 }
 0x2c9   :  { %v996_v56 = vpop.eup %995 }
 0x2ca   :  { %v998_v57 = vpop.eup %997  ;;  %v917_v58 = vcombine.low %v992_v54, %v996_v56 }
 0x2cb   :  { %v918_v59 = vcombine.low %v994_v55, %v998_v57 }
 0x2cc   :  { %921 = vst [vmem:[%s1203_s9] sm:$0x77] %v917_v58 }
 0x2cd   :  { %922 = vst [vmem:[%s1203_s9 + $0x8] sm:$0x77] %v918_v59 }

</bundles_post_ra>
